<compile_context>
chip_gen: v7x
topology: tpu7x:2x2x1
jax: 0.10.0
libtpu: 0.0.40
codegen_flags: <defaults>
</compile_context>

<pallas_src>
import math

import jax
import jax.numpy as jnp
from jax.experimental import pallas as pl
from jax.experimental.pallas import tpu as pltpu

_LANE = 128
_SUBLANE = 8


# ----------------------------------------------------------------------------
# Kernel: pure VPU combine, one (tile, C) output block per grid step.
# ----------------------------------------------------------------------------
def _pe_combine_kernel(sin_a_ref, cos_a_ref, t1_ref, t2_ref, o_ref):
    # sin_a / cos_a: (1, 1, C) per-tile base-angle rows (grid-indexed).
    # t1 / t2:       (tile, C) within-tile tables, resident (constant index).
    # even dim: sinA*cosB + cosA*sinB = sin(A+B)
    # odd  dim: -sinA*sinB + cosA*cosB = cos(A+B)      (select baked into T1/T2)
    a_sin = sin_a_ref[0]                       # (1, C)
    a_cos = cos_a_ref[0]                       # (1, C)
    o_ref[...] = a_sin * t1_ref[...] + a_cos * t2_ref[...]


# ----------------------------------------------------------------------------
# Generation-aware VMEM budget / tile choice.
# ----------------------------------------------------------------------------
def _vmem_budget_bytes() -> int:
    phys = 64 * 1024 * 1024                    # conservative (v7x per-TC VMEM)
    try:
        phys = int(pltpu.get_tpu_info().vmem_capacity_bytes)
    except Exception:
        pass
    # Spend at most half of physical VMEM on this kernel, never more than 64MiB.
    # v5e/v6e (128 MiB) -> 64 MiB, v7x (64 MiB) -> 32 MiB, unknown -> 32 MiB.
    return max(8 * 1024 * 1024, min(phys // 2, 64 * 1024 * 1024))


def _choose_tile_rows(r_rows: int, num_cols: int, budget_bytes: int) -> int:
    # VMEM accounting: 2x output block (double buffer) + up to 2x2 table
    # blocks + tiny per-tile rows  =>  cap one block at budget/8 for headroom.
    block_cap = max(_SUBLANE * num_cols * 4, budget_bytes // 8)
    cap_rows = max(_SUBLANE, (block_cap // (num_cols * 4)) // _SUBLANE * _SUBLANE)
    tile = min(max(r_rows, 1), cap_rows)
    tile = -(-tile // _SUBLANE) * _SUBLANE      # round up to sublane multiple
    # Make sure the grid has >= 2 blocks when there is enough work, so the
    # "parallel" axis really uses both v7x TensorCores.
    if r_rows > _SUBLANE and pl.cdiv(r_rows, tile) < 2:
        tile = max(_SUBLANE, -(-pl.cdiv(r_rows, 2) // _SUBLANE) * _SUBLANE)
    return tile


# ----------------------------------------------------------------------------
# One-time table build at max_len.
# ----------------------------------------------------------------------------
def _build_pe(d_model: int, max_len: int) -> jax.Array:
    # Lane-dense slab: fold positions per 128-lane row. C is always a
    # multiple of 128 so output stores are full, unmasked vregs.
    if d_model % _LANE == 0:
        fold = 1
    else:
        fold = _LANE // math.gcd(d_model, _LANE)
    C = fold * d_model

    r_rows = pl.cdiv(max_len, fold)            # rows actually needed
    budget = _vmem_budget_bytes()
    tile = _choose_tile_rows(r_rows, C, budget)
    num_tiles = pl.cdiv(r_rows, tile)
    R = num_tiles * tile                       # padded rows; sliced off below

    # ---- per-lane constants (column c -> dim d = c % d_model, offset c//d_model)
    d = jnp.arange(d_model, dtype=jnp.float32)
    omega_d = jnp.exp(jnp.floor(d * 0.5) * 2.0 * (-math.log(10000.0) / d_model))
    odd_d = (jnp.arange(d_model) % 2) == 1
    omega_c = jnp.tile(omega_d, fold)                                     # (C,)
    odd_c = jnp.tile(odd_d, fold)                                         # (C,)
    lane_off = jnp.repeat(jnp.arange(fold, dtype=jnp.float32), d_model)   # (C,)

    # ---- within-tile tables, identical for every tile (stay resident in VMEM)
    r_local = jnp.arange(tile, dtype=jnp.float32)[:, None]                # (tile,1)
    b = (r_local * fold + lane_off[None, :]) * omega_c[None, :]           # (tile,C)
    sin_b, cos_b = jnp.sin(b), jnp.cos(b)
    t1 = jnp.where(odd_c[None, :], -sin_b, cos_b).astype(jnp.float32)
    t2 = jnp.where(odd_c[None, :], cos_b, sin_b).astype(jnp.float32)

    # ---- per-tile base-angle rows (one (1, C) pair per grid step)
    tile_base = (jnp.arange(num_tiles, dtype=jnp.float32) * (tile * fold))[:, None]
    a = tile_base * omega_c[None, :]                                      # (T, C)
    sin_a = jnp.sin(a)[:, None, :].astype(jnp.float32)                    # (T,1,C)
    cos_a = jnp.cos(a)[:, None, :].astype(jnp.float32)                    # (T,1,C)

    cost = pl.CostEstimate(
        flops=3 * R * C,
        transcendentals=0,
        bytes_accessed=4 * (R * C + 2 * tile * C + 2 * num_tiles * C))

    pe_slab = pl.pallas_call(
        _pe_combine_kernel,
        out_shape=jax.ShapeDtypeStruct((R, C), jnp.float32),
        grid=(num_tiles,),
        in_specs=[
            pl.BlockSpec((1, 1, C), lambda i: (i, 0, 0)),   # sin_a per tile
            pl.BlockSpec((1, 1, C), lambda i: (i, 0, 0)),   # cos_a per tile
            pl.BlockSpec((tile, C), lambda i: (0, 0)),      # t1 (resident)
            pl.BlockSpec((tile, C), lambda i: (0, 0)),      # t2 (resident)
        ],
        out_specs=pl.BlockSpec((tile, C), lambda i: (i, 0)),
        compiler_params=pltpu.CompilerParams(
            dimension_semantics=("parallel",),
            vmem_limit_bytes=budget),
        cost_estimate=cost,
    )(sin_a, cos_a, t1, t2)

    # slab flat order == (position, dim) flat order -> plain reshape + slice
    pe = pe_slab.reshape(R * fold, d_model)[:max_len]
    return pe[None, :, :]


# ----------------------------------------------------------------------------
# Forward: build once per (d_model, max_len), slice per call (register_buffer).
# ----------------------------------------------------------------------------
_PE_CACHE: dict = {}


def positional_embedding(x: jax.Array, d_model: int, max_len: int) -> jax.Array:
    """Forward pass of PositionalEmbedding: returns pe[:, :x.shape[1]]."""
    seq_len = x.shape[1]
    assert seq_len <= max_len, "sequence longer than max_len"
    key = (d_model, max_len)
    if key not in _PE_CACHE:
        _PE_CACHE[key] = _build_pe(d_model, max_len)
    return _PE_CACHE[key][:, :seq_len]


# ----------------------------------------------------------------------------
# Pure-JAX reference mirroring the PyTorch buffer construction.
# ----------------------------------------------------------------------------
def _reference(seq_len: int, d_model: int) -> jnp.ndarray:
    position = jnp.arange(seq_len, dtype=jnp.float32)[:, None]
    div_term = jnp.exp(
        jnp.arange(0, d_model, 2, dtype=jnp.float32)
        * (-math.log(10000.0) / d_model))
    pe = jnp.zeros((seq_len, d_model), dtype=jnp.float32)
    pe = pe.at[:, 0::2].set(jnp.sin(position * div_term))
    pe = pe.at[:, 1::2].set(jnp.cos(position * div_term))
    return pe[None, :, :]


if __name__ == "__main__":
    key = jax.random.PRNGKey(0)

    # Primary small config: batch=2, seq=8, d_model=32, max_len=64.
    d_model, max_len, batch, seq = 32, 64, 2, 8
    x = jax.random.randint(key, (batch, seq), 0, 100, dtype=jnp.int32)
    out = jax.block_until_ready(
        positional_embedding(x, d_model=d_model, max_len=max_len))
    assert out.shape == (1, seq, d_model)
    assert out.dtype == jnp.float32
    assert jnp.allclose(out, _reference(seq, d_model), atol=2e-5, rtol=1e-5)

    # Same cached max_len table, different seq_len -> pure slice, no rebuild.
    x_long = jax.random.randint(key, (batch, 33), 0, 100, dtype=jnp.int32)
    out_long = jax.block_until_ready(
        positional_embedding(x_long, d_model=d_model, max_len=max_len))
    assert jnp.allclose(out_long, _reference(33, d_model), atol=2e-5, rtol=1e-5)

    # d_model already a multiple of 128 (fold=1 path, >=2-block grid).
    d2, s2 = 256, 16
    x2 = jax.random.randint(key, (batch, s2), 0, 100, dtype=jnp.int32)
    out2 = jax.block_until_ready(positional_embedding(x2, d_model=d2, max_len=64))
    assert jnp.allclose(out2, _reference(s2, d2), atol=2e-5, rtol=1e-5)

    # d_model that neither divides nor is a multiple of 128 (general fold path).
    d3, s3 = 48, 10
    x3 = jax.random.randint(key, (batch, s3), 0, 100, dtype=jnp.int32)
    out3 = jax.block_until_ready(positional_embedding(x3, d_model=d3, max_len=40))
    assert jnp.allclose(out3, _reference(s3, d3), atol=2e-5, rtol=1e-5)

    print("KERNEL_OK")
</pallas_src>

<mosaic_0001>
module attributes {stable_mosaic.version = 11 : i64} {
  func.func @_pe_combine_kernel(%arg0: i32, %arg1: memref<1x1x128xf32, #tpu.memory_space<vmem>>, %arg2: memref<1x1x128xf32, #tpu.memory_space<vmem>>, %arg3: memref<8x128xf32, #tpu.memory_space<vmem>>, %arg4: memref<8x128xf32, #tpu.memory_space<vmem>>, %arg5: memref<8x128xf32, #tpu.memory_space<vmem>>) attributes {dimension_semantics = [#tpu.dimension_semantics<parallel>], iteration_bounds = array<i64: 2>, scalar_prefetch = 0 : i64, scratch_operands = 0 : i64, tpu.core_type = #tpu.core_type<tc>, window_params = [{transform_indices = @transform_0, window_bounds = array<i64: 1, 1, 128>}, {transform_indices = @transform_1, window_bounds = array<i64: 1, 1, 128>}, {pipeline_mode = #tpu.pipeline_mode<synchronous>, transform_indices = @transform_2, window_bounds = array<i64: 8, 128>}, {pipeline_mode = #tpu.pipeline_mode<synchronous>, transform_indices = @transform_3, window_bounds = array<i64: 8, 128>}, {transform_indices = @transform_4, window_bounds = array<i64: 8, 128>}]} {
    %c0 = arith.constant 0 : index
    %c0_0 = arith.constant 0 : index
    %c0_1 = arith.constant 0 : index
    %0 = vector.load %arg1[%c0, %c0_0, %c0_1] : memref<1x1x128xf32, #tpu.memory_space<vmem>>, vector<1x1x128xf32>
    %1 = vector.shape_cast %0 : vector<1x1x128xf32> to vector<1x128xf32>
    %c0_2 = arith.constant 0 : index
    %c0_3 = arith.constant 0 : index
    %c0_4 = arith.constant 0 : index
    %2 = vector.load %arg2[%c0_2, %c0_3, %c0_4] : memref<1x1x128xf32, #tpu.memory_space<vmem>>, vector<1x1x128xf32>
    %3 = vector.shape_cast %2 : vector<1x1x128xf32> to vector<1x128xf32>
    %c0_5 = arith.constant 0 : index
    %c0_6 = arith.constant 0 : index
    %4 = vector.load %arg3[%c0_5, %c0_6] : memref<8x128xf32, #tpu.memory_space<vmem>>, vector<8x128xf32>
    %5 = vector.broadcast %1 : vector<1x128xf32> to vector<8x128xf32>
    %6 = arith.mulf %5, %4 : vector<8x128xf32>
    %c0_7 = arith.constant 0 : index
    %c0_8 = arith.constant 0 : index
    %7 = vector.load %arg4[%c0_7, %c0_8] : memref<8x128xf32, #tpu.memory_space<vmem>>, vector<8x128xf32>
    %8 = vector.broadcast %3 : vector<1x128xf32> to vector<8x128xf32>
    %9 = arith.mulf %8, %7 : vector<8x128xf32>
    %10 = arith.addf %6, %9 : vector<8x128xf32>
    %c0_9 = arith.constant 0 : index
    %c0_10 = arith.constant 0 : index
    %11 = vector.load %arg5[%c0_9, %c0_10] : memref<8x128xf32, #tpu.memory_space<vmem>>, vector<8x128xf32>
    tpu.vector_store %arg5[%c0_9, %c0_10], %10 {strides = array<i32>} : memref<8x128xf32, #tpu.memory_space<vmem>>, vector<8x128xf32>,
    return
  }
  func.func @transform_0(%arg0: i32) -> (i32, i32, i32) {
    %c0_i32 = arith.constant 0 : i32
    %c0_i32_0 = arith.constant 0 : i32
    %c0_i32_1 = arith.constant 0 : i32
    return %arg0, %c0_i32, %c0_i32_0 : i32, i32, i32
  }
  func.func @transform_1(%arg0: i32) -> (i32, i32, i32) {
    %c0_i32 = arith.constant 0 : i32
    %c0_i32_0 = arith.constant 0 : i32
    %c0_i32_1 = arith.constant 0 : i32
    return %arg0, %c0_i32, %c0_i32_0 : i32, i32, i32
  }
  func.func @transform_2(%arg0: i32) -> (i32, i32) {
    %c0_i32 = arith.constant 0 : i32
    %c0_i32_0 = arith.constant 0 : i32
    %c0_i32_1 = arith.constant 0 : i32
    return %c0_i32, %c0_i32_0 : i32, i32
  }
  func.func @transform_3(%arg0: i32) -> (i32, i32) {
    %c0_i32 = arith.constant 0 : i32
    %c0_i32_0 = arith.constant 0 : i32
    %c0_i32_1 = arith.constant 0 : i32
    return %c0_i32, %c0_i32_0 : i32, i32
  }
  func.func @transform_4(%arg0: i32) -> (i32, i32) {
    %c0_i32 = arith.constant 0 : i32
    %c0_i32_0 = arith.constant 0 : i32
    return %arg0, %c0_i32 : i32, i32
  }
}

</mosaic_0001>

<bundles_post_ra>
// kernel: tpu_custom_call.1
= control target key start
LH: loop header
LB: loop body
LE: loop exit
PB: predicated region body
PF: predicated region fallthrough
CT: control target
= control target key end

     0   :  { %9 = vsyncpa [#allocation3], 0  ;;  %s796_s0 = inlined_call_operand.hbm [shape: f32[2,1,128], index: 0, kind: input, shape index: {}]   ;;  %s797_s1 = inlined_call_operand.vmem [shape: f32[2,1,128], index: 1, kind: input, shape index: {}]   ;;  %s798_s2 = inlined_call_operand.hbm [shape: f32[8,128], index: 2, kind: input, shape index: {}]   ;;  %s799_s3 = inlined_call_operand.vmem [shape: f32[8,128], index: 3, kind: input, shape index: {}]   ;;  %s800_s4 = inlined_call_operand.hbm [shape: f32[16,128], index: 4, kind: output, shape index: {}]  }
   0x1   :  { %11 = vsyncpa [#allocation3 + $0x1], 0 }
   0x2   :  { %12 = vsyncpa [#allocation6], 0 }
   0x3   :  { %13 = vsyncpa [#allocation4], 0 }
   0x4   :  { %15 = vsyncpa [#allocation4 + $0x1], 0  ;;  %s586_s15 = smov 0   ;;  %s588_s16 = smov 0  }
   0x5   :  { %s590_s17 = smov 0   ;;  %s592_s18 = smov 0  }
   0x6 LB: > { %s607_s19 = sadd.s32 4294967295, %s556_s18   ;;  %s357_s20 = sadd.s32 4294967294, %s556_s18   ;;  %s556_s18 = sphi %s592_s18, %s824_s18   ;;  %s552_s17 = sphi %s590_s17, %s823_s17   ;;  %s548_s16 = sphi %s588_s16, %s822_s16   ;;  %s544_s15 = sphi %s586_s15, %s821_s15  }
   0x7   : > { %p41_p0 = scmp.ne.s32.totalorder %s548_s16, %s544_s15  ;;  %p801_p1 = scmp.eq.s32.totalorder %s607_s19, 0 }
   0x8   : > { %p139_p3 = scmp.eq.s32.totalorder %s357_s20, 1  ;;  %p358_p5 = scmp.ge.s32.totalorder %s556_s18, 1 }
   0x9   : > { %p616_p4 = por %p801_p1, %p41_p0  ;;  %p146_p7 = scmp.lt.s32.totalorder %s556_s18, 3 }
   0xa   : > { %p621_p6 = por %p139_p3, %p41_p0  ;;  %s558_s24 = smov [#allocation5]  }
   0xb   : > { %s804_s21 = scalar_select %p616_p4, 1, 0 }
   0xc   : > { %s805_s22 = scalar_select %p621_p6, 1, 0 }
   0xd   : > { %p626_p8 = pnand %p358_p5, %p146_p7  ;;  %s159_s25 = sshll.u32 %s558_s24, 4  ;;  %s160_s25 = int_to_ptr.vmem [resolvable:$true] %s159_s25 }
   0xe   : > { %s634_s26 = sadd.s32 1, %s556_s18   ;;  %s28_s30 = sadd.s32 1, %s552_s17 }
   0xf   : > { %s806_s23 = scalar_select %p626_p8, 1, 0 }
  0x10   : > { %p379_p10 = pneg %p626_p8  ;;  %s25_s28 = ssub.s32 %s556_s18, %s634_s26 }
  0x11   : > { %p644_p12 = scmp.eq.s32.totalorder %s25_s28, 0  ;;  %s428_s7 = scalar_lea.hbm %s798_s2, 128 }
  0x12   : > { %p638_p11 = pnand %p379_p10, %p801_p1  ;;  %p429_p0 = scmp.ne.s32.totalorder %s798_s2, %s428_s7 }
  0x13   : > { %s808_s29 = scalar_select %p644_p12, 1, 0 }
  0x14   : > { %p430_p3 = pneg %p638_p11  ;;  %p435_p10 = scmp.lt.u32.totalorder %s428_s7, %s798_s2 }
  0x16   : > { %p431_p5 = pnand %p430_p3, %p429_p0 }
  0x18   : > { %p432_p7 = pneg %p431_p5 }
  0x1a   : > { %p437_p9 = pnand %p435_p10, %p432_p7 }
  0x1c   : > { %440 = shalt.err (!%p437_p9)
}
  0x1d   : > { %s441_s12 = scalar_lea.vmem %s160_s25, 128  ;;  %p449_p6 = scmp.lt.s32.totalorder %s160_s25, %s160_s25 }
  0x1e   : > { %p442_p1 = scmp.ne.s32.totalorder %s160_s25, %s441_s12  ;;  %p450_p4 = scmp.lt.s32.totalorder %s441_s12, %s441_s12 }
  0x20   : > { %p444_p2 = pnand %p442_p1, %p430_p3  ;;  %p451_p8 = por %p450_p4, %p449_p6 }
  0x22   : > { %p445_p13 = pneg %p444_p2 }
  0x24   : > { %p452_p12 = pnand %p451_p8, %p445_p13 }
  0x26   : > { %455 = shalt.err (!%p452_p12)
}
  0x27   : > { %382 = dma.hbm_to_vmem [thread:$0]  (!%p638_p11), %s798_s2, 128, %s160_s25, [#allocation6]  }
  0x28   : > { %p809_p1 = scmp.ne.s32.totalorder %s808_s29, 0  ;;  %p36_p2 = scmp.eq.s32.totalorder %s556_s18, 0 }
  0x29   : > { %p810_p4 = scmp.ne.s32.totalorder %s552_s17, %s548_s16  ;;  %p811_p6 = scmp.eq.s32.totalorder %s607_s19, 1 }
  0x2a   : > { %s670_s20 = scalar_select %p809_p1, %s552_s17, %s28_s30  }
  0x2b   : > { %p678_p8 = por %p811_p6, %p810_p4  ;;  %p392_p9 = scmp.lt.s32.totalorder %s556_s18, 2 }
  0x2c   : > { %s173_s27 = sand.u32 1, %s552_s17   ;;  %p813_p12 = pmov %p810_p4 }
  0x2d   : > { %s361_s28 = sshll.u32 %s556_s18, 4  ;;  %s176_s25 = scalar_lea.vmem [#allocation2], %s173_s27 }
  0x2e   : > { %p37_p13 = por %p36_p2, %p813_p12  ;;  %s691_s7 = scalar_lea.hbm %s796_s0, %s361_s28 }
  0x2f   : > { %s183_s29 = sshll.u32 %s176_s25, 4  ;;  %s174_s8 = scalar_lea.sflag [#allocation3], %s173_s27  ;;  %s693_s29 = int_to_ptr.vmem [resolvable:$true] %s183_s29 }
  0x30   : > { %p695_p11 = pnand %p392_p9, %p37_p13  ;;  %s456_s9 = scalar_lea.hbm %s691_s7, 16 }
  0x31   : > { %p457_p0 = scmp.ne.s32.totalorder %s691_s7, %s456_s9  ;;  %s461_s12 = scalar_lea.hbm %s796_s0, 32 }
  0x32   : > { %p458_p3 = pneg %p695_p11  ;;  %p462_p10 = scmp.lt.u32.totalorder %s691_s7, %s796_s0 }
  0x33   : > { %p463_p1 = scmp.lt.u32.totalorder %s461_s12, %s456_s9  ;;  %p465_p4 = scmp.lt.u32.totalorder %s456_s9, %s691_s7 }
  0x34   : > { %p459_p5 = pnand %p458_p3, %p457_p0 }
  0x35   : > { %p464_p2 = por %p463_p1, %p462_p10 }
  0x36   : > { %p460_p7 = pneg %p459_p5 }
  0x37   : > { %p466_p6 = por %p465_p4, %p464_p2 }
  0x39   : > { %p467_p9 = pnand %p466_p6, %p460_p7 }
  0x3b   : > { %470 = shalt.err (!%p467_p9)
}
  0x3c   : > { %s471_s27 = scalar_lea.vmem %s693_s29, 16  ;;  %s559_s28 = smov [#allocation2]  }
  0x3d   : > { %p472_p12 = scmp.ne.s32.totalorder %s693_s29, %s471_s27  ;;  %s476_s5 = sshll.u32 %s559_s28, 4  ;;  %s477_s5 = int_to_ptr.vmem [resolvable:$false] %s476_s5 }
  0x3e   : > { %s478_s6 = scalar_lea.vmem %s477_s5, 32  ;;  %p479_p5 = scmp.lt.s32.totalorder %s693_s29, %s477_s5 }
  0x3f   : > { %p474_p13 = pnand %p472_p12, %p458_p3  ;;  %p480_p10 = scmp.lt.s32.totalorder %s478_s6, %s471_s27 }
  0x41   : > { %p475_p0 = pneg %p474_p13  ;;  %p481_p1 = por %p480_p10, %p479_p5 }
  0x43   : > { %p482_p2 = pnand %p481_p1, %p475_p0 }
  0x45   : > { %485 = shalt.err (!%p482_p2)
}
  0x46   : > { %386 = dma.hbm_to_vmem [thread:$0]  (!%p695_p11), %s691_s7, 16, %s693_s29, %s174_s8  }
  0x47   : > { %p815_p7 = scmp.ne.s32.totalorder %s806_s23, 0 }
  0x48   : > { %s727_s25 = sand.u32 (!%p815_p7), 1, %s548_s16   ;;  %p816_p3 = scmp.ne.s32.totalorder (!%p815_p7), %s804_s21, 0 }
  0x49   : > { %198 = sbr.rel (%p815_p7) target bundleno = 111 (0x6f), region = 36  ;;  %s201_s9 = scalar_lea.sflag (!%p815_p7), [#allocation3], %s727_s25 }
  0x4a   : > { %s203_s10 = scalar_lea.vmem (!%p815_p7), [#allocation2], %s727_s25 }
  0x50   : > { %531 = dma.done.wait (%p816_p3), %s201_s9, 16  }
  0x51   : > { %533 = vsyncadd (%p816_p3), %s201_s9, 4294967280  ;;  %p817_p4 = scmp.eq.s32.totalorder %s607_s19, 0 }
  0x53   : > { %535 = dma.done.wait (%p817_p4), [#allocation6], 128   ;;  %p818_p11 = pmov %p817_p4 }
  0x54   : > { %p234_p6 = scmp.lt.s32.totalorder %s607_s19, 1  ;;  %s364_s23 = sshll.u32 %s727_s25, 3  ;;  %v365_v0 = vld [vmem:[%s203_s10] ss:$0 sm:$0xff]  ;;  %v239_v2 = vld [vmem:[#allocation5] sm:$0xff] }
  0x55   : > { %537 = vsyncadd (%p818_p11), [#allocation6], 4294967168  ;;  %v246_v3 = vmul.f32 %v365_v0, %v239_v2  ;;  %v247_v4 = vld [vmem:[%s799_s3] sm:$0xff]  ;;  %s233_s12 = scalar_lea.vmem [#allocation7], %s364_s23  ;;  %s368_s14 = sshll.u32 %s607_s19, 7 }
  0x56   : > { %s235_s7 = scalar_select %p234_p6, %s607_s19, 1 }
  0x57   : > { %s271_s13 = sshll.u32 %s233_s12, 4  ;;  %s754_s5 = scalar_lea.hbm %s800_s4, %s368_s14  ;;  %s749_s13 = int_to_ptr.vmem [resolvable:$true] %s271_s13 }
  0x58   : > { %s236_s8 = scalar_lea.vmem %s797_s1, %s235_s7  ;;  %s258_s6 = scalar_lea.sflag [#allocation4], %s727_s25 }
  0x59   : > { %v366_v1 = vld [vmem:[%s236_s8] ss:$0 sm:$0xff]  ;;  %s486_s9 = scalar_lea.vmem %s749_s13, 128  ;;  %s560_s19 = smov [#allocation7]  }
  0x5a   : > { %v254_v5 = vmul.f32 %v366_v1, %v247_v4  ;;  %p487_p9 = scmp.ne.s32.totalorder %s749_s13, %s486_s9  ;;  %s490_s10 = sshll.u32 %s560_s19, 4  ;;  %s491_s10 = int_to_ptr.vmem [resolvable:$false] %s490_s10 }
  0x5b   : > { %s492_s23 = scalar_lea.vmem %s491_s10, 256  ;;  %p493_p0 = scmp.lt.s32.totalorder %s749_s13, %s491_s10 }
  0x5c   : > { %v255_v6 = vadd.f32 %v254_v5, %v246_v3  ;;  %p488_p12 = pnand %p487_p9, %p678_p8  ;;  %p494_p5 = scmp.lt.s32.totalorder %s492_s23, %s486_s9 }
  0x5e   : > { %256 = vst [vmem:[%s233_s12] sm:$0xff] %v255_v6  ;;  %p489_p13 = pneg %p488_p12  ;;  %p495_p10 = por %p494_p5, %p493_p0 }
  0x60   : > { %p496_p1 = pnand %p495_p10, %p489_p13 }
  0x62   : > { %499 = shalt.err (!%p496_p1)
}
  0x63   : > { %s500_s25 = scalar_lea.hbm %s754_s5, 128  ;;  %s504_s30 = scalar_lea.hbm %s800_s4, 256 }
  0x64   : > { %p501_p2 = scmp.ne.s32.totalorder %s754_s5, %s500_s25  ;;  %p505_p4 = scmp.lt.u32.totalorder %s754_s5, %s800_s4 }
  0x65   : > { %p506_p11 = scmp.lt.u32.totalorder %s504_s30, %s500_s25  ;;  %p508_p9 = scmp.lt.u32.totalorder %s500_s25, %s754_s5 }
  0x66   : > { %p502_p7 = pnand %p501_p2, %p678_p8 }
  0x67   : > { %p507_p6 = por %p506_p11, %p505_p4 }
  0x68   : > { %p503_p3 = pneg %p502_p7 }
  0x69   : > { %p509_p12 = por %p508_p9, %p507_p6 }
  0x6b   : > { %p510_p13 = pnand %p509_p12, %p503_p3 }
  0x6d   : > { %513 = shalt.err (!%p510_p13)
}
  0x6e   : > { %377 = dma.vmem_to_hbm [thread:$0]  (%p678_p8), %s749_s13, 128, %s754_s5, %s258_s6  }
  0x6f PF: > { %s283_s11 = sand.u32 1, %s544_s15   ;;  %p819_p0 = scmp.ne.s32.totalorder %s805_s22, 0 }
  0x70   : > { %p820_p5 = scmp.ge.s32.totalorder %s556_s18, 2  ;;  %s284_s12 = scalar_lea.sflag [#allocation4], %s283_s11 }
  0x72   : > { %p388_p10 = pnand %p820_p5, %p819_p0 }
  0x74   : > { %539 = dma.done.wait (!%p388_p10), %s284_s12, 128  }
  0x75   : > { %541 = vsyncadd (!%p388_p10), %s284_s12, 4294967168  ;;  %p18_p1 = scmp.ge.s32.totalorder %s634_s26, 4   ;;  %s821_s15 = smov %s548_s16 }
  0x76   : > { %s822_s16 = smov %s552_s17  ;;  %s823_s17 = smov %s670_s20 }
  0x77   : > { %s824_s18 = smov %s634_s26  ;;  %20 = sbr.rel (!%p18_p1) target bundleno = 6 (0x6), region = 88 }
  0x7e   :  { %289 = vsyncpa [#allocation3], 1 }
  0x7f   :  { %291 = vsyncpa [#allocation3 + $0x1], 1 }
  0x80   :  { %292 = vsyncpa [#allocation6], 1 }
  0x81   :  { %293 = vsyncpa [#allocation4], 1 }
  0x82   :  { %295 = vsyncpa [#allocation4 + $0x1], 1 }

</bundles_post_ra>
